<compile_context>
chip_gen: v6e
topology: v6e:2x2x1
jax: 0.10.0
libtpu: 0.0.40
codegen_flags: <defaults>
</compile_context>

<pallas_src>
import functools

import jax
import jax.numpy as jnp
import numpy as np
from jax import lax
from jax.experimental import pallas as pl
from jax.experimental.pallas import tpu as pltpu


# --------------------------------------------------------------------------------------
# Kernel
# --------------------------------------------------------------------------------------
def _mbart_gqa_kernel(x_ref, wq_ref, bq_ref, wkv_ref, bkv_ref, wo_ref, bo_ref,
                      o_ref, acc_ref, k_ref, v_ref, *,
                      n_rep, head_dim, tq, approx_reciprocal):
    """One grid step = (batch b, query-tile t, KV-head group g).  g is innermost."""
    t = pl.program_id(1)
    g = pl.program_id(2)
    n_g = pl.num_programs(2)
    D = head_dim
    cdt = x_ref.dtype                              # MXU operand dtype (f32 or bf16)

    # ---- (1) fused K/V projection, cached across query tiles (computed at t == 0) ----
    @pl.when(t == 0)
    def _():
        kv = jnp.dot(x_ref[...], wkv_ref[g],
                     preferred_element_type=jnp.float32) + bkv_ref[g]        # (S, 2D) f32
        k_ref[g] = kv[:, :D].astype(k_ref.dtype)
        v_ref[g] = kv[:, D:].astype(v_ref.dtype)

    # ---- (2) Q projection for this tile (scaling & bias already folded on host) ----
    row0 = pl.multiple_of(t * tq, tq)
    x_t = x_ref[pl.ds(row0, tq), :]                                          # (tq, E)
    q_g = jnp.dot(x_t, wq_ref[g],
                  preferred_element_type=jnp.float32) + bq_ref[g]            # (tq, gdim) f32

    k = k_ref[g]                                                             # (S, D) cdt
    v = v_ref[g]                                                             # (S, D) cdt

    # ---- (3) per-head attention + partial output projection (summed over heads) ----
    out_g = None
    for h in range(n_rep):
        q_h = q_g[:, h * D:(h + 1) * D].astype(cdt)                          # (tq, D)
        # contract head_dim of both operands (no materialized k transpose)
        s = lax.dot_general(q_h, k, (((1,), (1,)), ((), ())),
                            preferred_element_type=jnp.float32)              # (tq, S)
        s = s - jnp.max(s, axis=-1, keepdims=True)
        p = jnp.exp(s)
        denom = jnp.sum(p, axis=-1, keepdims=True)
        if approx_reciprocal:
            p = p * pl.reciprocal(denom, approx=True)
        else:
            p = p / denom
        ctx = jnp.dot(p.astype(cdt), v, preferred_element_type=jnp.float32)  # (tq, D)
        part_h = jnp.dot(ctx.astype(cdt), wo_ref[g * n_rep + h],
                         preferred_element_type=jnp.float32)                 # (tq, E)
        out_g = part_h if out_g is None else out_g + part_h

    # ---- (4) accumulate the output projection over KV groups (bias fused at g==0) ----
    @pl.when(g == 0)
    def _():
        acc_ref[...] = out_g + bo_ref[...]

    @pl.when(g > 0)
    def _():
        acc_ref[...] += out_g

    @pl.when(g == n_g - 1)
    def _():
        o_ref[...] = acc_ref[...].astype(o_ref.dtype)


# --------------------------------------------------------------------------------------
# Host-side helpers
# --------------------------------------------------------------------------------------
def prepare_params(params, *, num_heads, num_kv_heads, compute_dtype=jnp.float32):
    """One-time weight relayout (do this at parameter-load time, not per call).

    PyTorch layout -> grouped, pre-transposed layouts so the kernel never transposes a
    weight, the K/V projection is a single fused matmul, and the softmax scaling is folded
    into Wq/bq.
    """
    E = params["wq"].shape[1]
    assert E % num_heads == 0 and num_heads % num_kv_heads == 0
    D = E // num_heads
    G = num_kv_heads
    n_rep = num_heads // num_kv_heads
    gdim = n_rep * D
    scaling = D ** -0.5
    cdt = compute_dtype

    wq_g = (params["wq"].T * scaling).reshape(E, G, gdim).transpose(1, 0, 2).astype(cdt)
    bq_g = (params["bq"] * scaling).reshape(G, 1, gdim).astype(jnp.float32)

    wk_t = params["wk"].T.reshape(E, G, D)
    wv_t = params["wv"].T.reshape(E, G, D)
    wkv_g = jnp.concatenate([wk_t, wv_t], axis=-1).transpose(1, 0, 2).astype(cdt)  # (G,E,2D)
    bkv_g = jnp.concatenate([params["bk"].reshape(G, 1, D),
                             params["bv"].reshape(G, 1, D)], axis=-1).astype(jnp.float32)

    wo_h = params["wo"].T.reshape(num_heads, D, E).astype(cdt)                      # (H,D,E)
    bo = params["bo"].reshape(1, E).astype(jnp.float32)

    return dict(wq=wq_g, bq=bq_g, wkv=wkv_g, bkv=bkv_g, wo=wo_h, bo=bo,
                num_heads=num_heads, num_kv_heads=num_kv_heads, head_dim=D,
                compute_dtype=cdt)


def _choose_q_tile(S, max_tile=512):
    """Largest divisor of S that is a multiple of 8 and <= max_tile; else S."""
    if S <= max_tile:
        return S
    for t in range(max_tile, 7, -1):
        if S % t == 0 and t % 8 == 0:
            return t
    return S


def _buf_bytes(shape, dtype):
    """VMEM footprint of a buffer with (8,128) last-two-dim padding."""
    pad = [int(d) for d in shape]
    pad[-1] = -(-pad[-1] // 128) * 128
    if len(pad) >= 2:
        pad[-2] = -(-pad[-2] // 8) * 8
    n = 1
    for d in pad:
        n *= d
    return n * jnp.dtype(dtype).itemsize


# --------------------------------------------------------------------------------------
# Wrapper
# --------------------------------------------------------------------------------------
def mbart_gqa_attention(x, prepared, *, max_q_tile=512, approx_reciprocal=True):
    """x: (B, S, E); prepared: output of prepare_params.  Returns (B, S, E)."""
    B, S, E = x.shape
    D = prepared["head_dim"]
    num_heads = prepared["num_heads"]
    G = prepared["num_kv_heads"]
    n_rep = num_heads // G
    gdim = n_rep * D
    kv_dim = G * D
    cdt = prepared["compute_dtype"]
    out_dtype = x.dtype

    tq = _choose_q_tile(S, max_q_tile)
    num_qt = S // tq
    grid = (B, num_qt, G)

    x_c = x.astype(cdt)

    kernel = functools.partial(_mbart_gqa_kernel, n_rep=n_rep, head_dim=D, tq=tq,
                               approx_reciprocal=approx_reciprocal)

    # Weights/biases: full-array blocks with constant index_map -> fetched once, VMEM
    # resident for the entire kernel.  x: one batch element, resident across (t, g).
    in_specs = [
        pl.BlockSpec((None, S, E), lambda b, t, g: (b, 0, 0)),          # x
        pl.BlockSpec((G, E, gdim), lambda b, t, g: (0, 0, 0)),          # Wq^T grouped
        pl.BlockSpec((G, 1, gdim), lambda b, t, g: (0, 0, 0)),          # bq (scaled)
        pl.BlockSpec((G, E, 2 * D), lambda b, t, g: (0, 0, 0)),         # fused Wk^T|Wv^T
        pl.BlockSpec((G, 1, 2 * D), lambda b, t, g: (0, 0, 0)),         # fused bk|bv
        pl.BlockSpec((num_heads, D, E), lambda b, t, g: (0, 0, 0)),     # Wo^T per head
        pl.BlockSpec((1, E), lambda b, t, g: (0, 0)),                   # bo
    ]
    out_specs = pl.BlockSpec((None, tq, E), lambda b, t, g: (b, t, 0))

    scratch_shapes = [
        pltpu.VMEM((tq, E), jnp.float32),   # output-projection accumulator
        pltpu.VMEM((G, S, D), cdt),         # cached K per group (reused across q-tiles)
        pltpu.VMEM((G, S, D), cdt),         # cached V per group
    ]

    # --- VMEM budget derived from actual buffer sizes (with (8,128) padding) ---
    weight_bytes = (_buf_bytes((G, E, gdim), cdt) + _buf_bytes((G, 1, gdim), jnp.float32)
                    + _buf_bytes((G, E, 2 * D), cdt) + _buf_bytes((G, 1, 2 * D), jnp.float32)
                    + _buf_bytes((num_heads, D, E), cdt) + _buf_bytes((1, E), jnp.float32))
    vmem_needed = (
        2 * _buf_bytes((S, E), cdt)                 # x (double-buffered)
        + 2 * weight_bytes                          # resident weights (conservative x2)
        + 2 * _buf_bytes((tq, E), out_dtype)        # output tile (double-buffered)
        + _buf_bytes((tq, E), jnp.float32)          # accumulator scratch
        + 2 * _buf_bytes((G, S, D), cdt)            # K/V scratch
        + 2 * _buf_bytes((tq, S), jnp.float32)      # live scores / probabilities
        + _buf_bytes((tq, gdim), jnp.float32)       # q_g
        + _buf_bytes((S, 2 * D), jnp.float32)       # kv projection temp
        + 2 * _buf_bytes((tq, E), jnp.float32)      # per-group partial outputs
    )
    vmem_limit = int(min(max(int(vmem_needed * 1.25), 32 * 1024 * 1024), 96 * 1024 * 1024))

    # --- cost estimate matching the real DMA pattern (weights read once) ---
    c_bytes = jnp.dtype(cdt).itemsize
    flops = B * (2 * S * E * E            # q projection
                 + 4 * S * E * kv_dim     # fused k/v projection
                 + 4 * S * S * E          # scores + p@v over all heads
                 + 2 * S * E * E)         # output projection
    transcendentals = B * num_heads * S * S
    bytes_accessed = (B * S * E * c_bytes                       # x read
                      + B * S * E * jnp.dtype(out_dtype).itemsize  # out write
                      + weight_bytes)                           # weights read once

    return pl.pallas_call(
        kernel,
        out_shape=jax.ShapeDtypeStruct((B, S, E), out_dtype),
        grid_spec=pltpu.PrefetchScalarGridSpec(
            num_scalar_prefetch=0,
            grid=grid,
            in_specs=in_specs,
            out_specs=out_specs,
            scratch_shapes=scratch_shapes,
        ),
        compiler_params=pltpu.CompilerParams(
            # q-tile axis must be "arbitrary": the K/V cache in scratch is filled at the
            # first q-tile of each batch element and reused by later tiles.
            dimension_semantics=("parallel", "arbitrary", "arbitrary"),
            vmem_limit_bytes=vmem_limit,
        ),
        cost_estimate=pl.CostEstimate(flops=flops, transcendentals=transcendentals,
                                      bytes_accessed=bytes_accessed),
    )(x_c, prepared["wq"], prepared["bq"], prepared["wkv"], prepared["bkv"],
      prepared["wo"], prepared["bo"])


# --------------------------------------------------------------------------------------
# Pure-JAX reference of the PyTorch forward (self-attn path, no mask, no dropout)
# --------------------------------------------------------------------------------------
def reference(x, params, *, num_heads, num_kv_heads):
    B, S, E = x.shape
    head_dim = E // num_heads
    n_rep = num_heads // num_kv_heads
    scaling = head_dim ** -0.5

    q = (x @ params["wq"].T + params["bq"]) * scaling
    k = x @ params["wk"].T + params["bk"]
    v = x @ params["wv"].T + params["bv"]

    q = q.reshape(B, S, num_heads, head_dim).transpose(0, 2, 1, 3)
    k = k.reshape(B, S, num_kv_heads, head_dim).transpose(0, 2, 1, 3)
    v = v.reshape(B, S, num_kv_heads, head_dim).transpose(0, 2, 1, 3)
    k = jnp.repeat(k, n_rep, axis=1)
    v = jnp.repeat(v, n_rep, axis=1)

    s = jnp.einsum("bhqd,bhkd->bhqk", q, k)
    p = jax.nn.softmax(s, axis=-1)
    attn = jnp.einsum("bhqk,bhkd->bhqd", p, v)
    attn = attn.transpose(0, 2, 1, 3).reshape(B, S, E)
    return attn @ params["wo"].T + params["bo"]


if __name__ == "__main__":
    B, S, E = 2, 8, 32
    num_heads, num_kv_heads = 4, 2
    head_dim = E // num_heads
    kv_dim = num_kv_heads * head_dim

    key = jax.random.PRNGKey(0)
    ks = jax.random.split(key, 9)
    scale = 0.05
    params = {
        "wq": scale * jax.random.normal(ks[0], (E, E), jnp.float32),
        "bq": scale * jax.random.normal(ks[1], (E,), jnp.float32),
        "wk": scale * jax.random.normal(ks[2], (kv_dim, E), jnp.float32),
        "bk": scale * jax.random.normal(ks[3], (kv_dim,), jnp.float32),
        "wv": scale * jax.random.normal(ks[4], (kv_dim, E), jnp.float32),
        "bv": scale * jax.random.normal(ks[5], (kv_dim,), jnp.float32),
        "wo": scale * jax.random.normal(ks[6], (E, E), jnp.float32),
        "bo": scale * jax.random.normal(ks[7], (E,), jnp.float32),
    }
    x = jax.random.normal(ks[8], (B, S, E), jnp.float32)

    ref = reference(x, params, num_heads=num_heads, num_kv_heads=num_kv_heads)

    # f32 MXU-operand path (tolerance loosened slightly for the EUP approx-reciprocal
    # softmax normalization — set approx_reciprocal=False for exact division).
    prep_f32 = prepare_params(params, num_heads=num_heads, num_kv_heads=num_kv_heads,
                              compute_dtype=jnp.float32)
    out = mbart_gqa_attention(x, prep_f32)
    out = jax.block_until_ready(out)
    np.testing.assert_allclose(np.asarray(out), np.asarray(ref), rtol=1e-2, atol=1e-2)

    # bf16 MXU-operand path (recommended on v6e/v7x), f32 accumulation — looser tolerance.
    prep_bf16 = prepare_params(params, num_heads=num_heads, num_kv_heads=num_kv_heads,
                               compute_dtype=jnp.bfloat16)
    out_bf16 = mbart_gqa_attention(x, prep_bf16)
    out_bf16 = jax.block_until_ready(out_bf16)
    np.testing.assert_allclose(np.asarray(out_bf16), np.asarray(ref), rtol=5e-2, atol=5e-2)

    print("KERNEL_OK")
</pallas_src>

<mosaic_0001>
module attributes {stable_mosaic.version = 11 : i64} {
  func.func @_mbart_gqa_kernel(%arg0: i32, %arg1: i32, %arg2: i32, %arg3: memref<1x8x32xf32, #tpu.memory_space<vmem>>, %arg4: memref<2x32x16xf32, #tpu.memory_space<vmem>>, %arg5: memref<2x1x16xf32, #tpu.memory_space<vmem>>, %arg6: memref<2x32x16xf32, #tpu.memory_space<vmem>>, %arg7: memref<2x1x16xf32, #tpu.memory_space<vmem>>, %arg8: memref<4x8x32xf32, #tpu.memory_space<vmem>>, %arg9: memref<1x32xf32, #tpu.memory_space<vmem>>, %arg10: memref<1x8x32xf32, #tpu.memory_space<vmem>>, %arg11: memref<8x32xf32, #tpu.memory_space<vmem>>, %arg12: memref<2x8x8xf32, #tpu.memory_space<vmem>>, %arg13: memref<2x8x8xf32, #tpu.memory_space<vmem>>) attributes {dimension_semantics = [#tpu.dimension_semantics<parallel>, #tpu.dimension_semantics<arbitrary>, #tpu.dimension_semantics<arbitrary>], iteration_bounds = array<i64: 2, 1, 2>, scalar_prefetch = 0 : i64, scratch_operands = 3 : i64, tpu.core_type = #tpu.core_type<tc>, window_params = [{transform_indices = @transform_0, window_bounds = array<i64: 1, 8, 32>}, {pipeline_mode = #tpu.pipeline_mode<synchronous>, transform_indices = @transform_1, window_bounds = array<i64: 2, 32, 16>}, {pipeline_mode = #tpu.pipeline_mode<synchronous>, transform_indices = @transform_2, window_bounds = array<i64: 2, 1, 16>}, {pipeline_mode = #tpu.pipeline_mode<synchronous>, transform_indices = @transform_3, window_bounds = array<i64: 2, 32, 16>}, {pipeline_mode = #tpu.pipeline_mode<synchronous>, transform_indices = @transform_4, window_bounds = array<i64: 2, 1, 16>}, {pipeline_mode = #tpu.pipeline_mode<synchronous>, transform_indices = @transform_5, window_bounds = array<i64: 4, 8, 32>}, {pipeline_mode = #tpu.pipeline_mode<synchronous>, transform_indices = @transform_6, window_bounds = array<i64: 1, 32>}, {transform_indices = @transform_7, window_bounds = array<i64: 1, 8, 32>}]} {
    %c0_i32 = arith.constant 0 : i32
    %0 = arith.cmpi eq, %arg1, %c0_i32 : i32
    %1 = arith.extui %0 : i1 to i32
    %c0_i32_0 = arith.constant 0 : i32
    %2 = arith.cmpi ne, %1, %c0_i32_0 : i32
    scf.if %2 {
      %c0_32 = arith.constant 0 : index
      %c0_33 = arith.constant 0 : index
      %c0_34 = arith.constant 0 : index
      %71 = vector.load %arg3[%c0_32, %c0_33, %c0_34] : memref<1x8x32xf32, #tpu.memory_space<vmem>>, vector<1x8x32xf32>
      %72 = vector.shape_cast %71 : vector<1x8x32xf32> to vector<8x32xf32>
      %73 = arith.index_cast %arg2 : i32 to index
      %c0_35 = arith.constant 0 : index
      %c0_36 = arith.constant 0 : index
      %74 = vector.load %arg6[%73, %c0_35, %c0_36] : memref<2x32x16xf32, #tpu.memory_space<vmem>>, vector<1x32x16xf32>
      %75 = vector.shape_cast %74 : vector<1x32x16xf32> to vector<32x16xf32>
      %cst_37 = arith.constant dense<0.000000e+00> : vector<8x16xf32>
      %76 = tpu.matmul %72, %75, %cst_37 {dimension_numbers = #tpu.dot_dimension_numbers<[1], [0], [0], [1], [0, 0, 1, 1], [], []>} : vector<8x32xf32>, vector<32x16xf32>, vector<8x16xf32> -> vector<8x16xf32>
      %77 = arith.index_cast %arg2 : i32 to index
      %c0_38 = arith.constant 0 : index
      %c0_39 = arith.constant 0 : index
      %78 = vector.load %arg7[%77, %c0_38, %c0_39] : memref<2x1x16xf32, #tpu.memory_space<vmem>>, vector<1x1x16xf32>
      %79 = vector.shape_cast %78 : vector<1x1x16xf32> to vector<1x16xf32>
      %80 = vector.broadcast %79 : vector<1x16xf32> to vector<8x16xf32>
      %81 = arith.addf %76, %80 : vector<8x16xf32>
      %82 = vector.extract_strided_slice %81 {offsets = [0, 0], sizes = [8, 8], strides = [1, 1]} : vector<8x16xf32> to vector<8x8xf32>
      %83 = arith.index_cast %arg2 : i32 to index
      %c0_40 = arith.constant 0 : index
      %c0_41 = arith.constant 0 : index
      %84 = vector.load %arg12[%83, %c0_40, %c0_41] : memref<2x8x8xf32, #tpu.memory_space<vmem>>, vector<1x8x8xf32>
      %85 = vector.shape_cast %84 : vector<1x8x8xf32> to vector<8x8xf32>
      %86 = vector.shape_cast %82 : vector<8x8xf32> to vector<1x8x8xf32>
      tpu.vector_store %arg12[%83, %c0_40, %c0_41], %86 {strides = array<i32>} : memref<2x8x8xf32, #tpu.memory_space<vmem>>, vector<1x8x8xf32>,
      %87 = vector.extract_strided_slice %81 {offsets = [0, 8], sizes = [8, 8], strides = [1, 1]} : vector<8x16xf32> to vector<8x8xf32>
      %88 = arith.index_cast %arg2 : i32 to index
      %c0_42 = arith.constant 0 : index
      %c0_43 = arith.constant 0 : index
      %89 = vector.load %arg13[%88, %c0_42, %c0_43] : memref<2x8x8xf32, #tpu.memory_space<vmem>>, vector<1x8x8xf32>
      %90 = vector.shape_cast %89 : vector<1x8x8xf32> to vector<8x8xf32>
      %91 = vector.shape_cast %87 : vector<8x8xf32> to vector<1x8x8xf32>
      tpu.vector_store %arg13[%88, %c0_42, %c0_43], %91 {strides = array<i32>} : memref<2x8x8xf32, #tpu.memory_space<vmem>>, vector<1x8x8xf32>,
    } else {
    }
    %c8_i32 = arith.constant 8 : i32
    %3 = arith.muli %arg1, %c8_i32 : i32
    %4 = tpu.assume_multiple %3, 8 : i32
    %c0 = arith.constant 0 : index
    %5 = arith.index_cast %4 : i32 to index
    %c0_1 = arith.constant 0 : index
    %6 = vector.load %arg3[%c0, %5, %c0_1] : memref<1x8x32xf32, #tpu.memory_space<vmem>>, vector<1x8x32xf32>
    %7 = vector.shape_cast %6 : vector<1x8x32xf32> to vector<8x32xf32>
    %8 = arith.index_cast %arg2 : i32 to index
    %c0_2 = arith.constant 0 : index
    %c0_3 = arith.constant 0 : index
    %9 = vector.load %arg4[%8, %c0_2, %c0_3] : memref<2x32x16xf32, #tpu.memory_space<vmem>>, vector<1x32x16xf32>
    %10 = vector.shape_cast %9 : vector<1x32x16xf32> to vector<32x16xf32>
    %cst = arith.constant dense<0.000000e+00> : vector<8x16xf32>
    %11 = tpu.matmul %7, %10, %cst {dimension_numbers = #tpu.dot_dimension_numbers<[1], [0], [0], [1], [0, 0, 1, 1], [], []>} : vector<8x32xf32>, vector<32x16xf32>, vector<8x16xf32> -> vector<8x16xf32>
    %12 = arith.index_cast %arg2 : i32 to index
    %c0_4 = arith.constant 0 : index
    %c0_5 = arith.constant 0 : index
    %13 = vector.load %arg5[%12, %c0_4, %c0_5] : memref<2x1x16xf32, #tpu.memory_space<vmem>>, vector<1x1x16xf32>
    %14 = vector.shape_cast %13 : vector<1x1x16xf32> to vector<1x16xf32>
    %15 = vector.broadcast %14 : vector<1x16xf32> to vector<8x16xf32>
    %16 = arith.addf %11, %15 : vector<8x16xf32>
    %17 = arith.index_cast %arg2 : i32 to index
    %c0_6 = arith.constant 0 : index
    %c0_7 = arith.constant 0 : index
    %18 = vector.load %arg12[%17, %c0_6, %c0_7] : memref<2x8x8xf32, #tpu.memory_space<vmem>>, vector<1x8x8xf32>
    %19 = vector.shape_cast %18 : vector<1x8x8xf32> to vector<8x8xf32>
    %20 = arith.index_cast %arg2 : i32 to index
    %c0_8 = arith.constant 0 : index
    %c0_9 = arith.constant 0 : index
    %21 = vector.load %arg13[%20, %c0_8, %c0_9] : memref<2x8x8xf32, #tpu.memory_space<vmem>>, vector<1x8x8xf32>
    %22 = vector.shape_cast %21 : vector<1x8x8xf32> to vector<8x8xf32>
    %23 = vector.extract_strided_slice %16 {offsets = [0, 0], sizes = [8, 8], strides = [1, 1]} : vector<8x16xf32> to vector<8x8xf32>
    %cst_10 = arith.constant dense<0.000000e+00> : vector<8x8xf32>
    %24 = tpu.matmul %23, %19, %cst_10 {dimension_numbers = #tpu.dot_dimension_numbers<[1], [1], [0], [0], [0, 0, 1, 0], [], []>} : vector<8x8xf32>, vector<8x8xf32>, vector<8x8xf32> -> vector<8x8xf32>
    %cst_11 = arith.constant dense<0xFF800000> : vector<8xf32>
    %25 = vector.multi_reduction <maximumf>, %24, %cst_11 [1] : vector<8x8xf32> to vector<8xf32>
    %26 = vector.shape_cast %25 : vector<8xf32> to vector<8x1xf32>
    %27 = vector.broadcast %26 : vector<8x1xf32> to vector<8x8xf32>
    %28 = arith.subf %24, %27 : vector<8x8xf32>
    %29 = math.exp %28 : vector<8x8xf32>
    %cst_12 = arith.constant dense<0.000000e+00> : vector<8xf32>
    %30 = vector.multi_reduction <add>, %29, %cst_12 [1] : vector<8x8xf32> to vector<8xf32>
    %31 = vector.shape_cast %30 : vector<8xf32> to vector<8x1xf32>
    %32 = tpu.reciprocal %31 {approx = true} : vector<8x1xf32> -> vector<8x1xf32>
    %33 = vector.broadcast %32 : vector<8x1xf32> to vector<8x8xf32>
    %34 = arith.mulf %29, %33 : vector<8x8xf32>
    %cst_13 = arith.constant dense<0.000000e+00> : vector<8x8xf32>
    %35 = tpu.matmul %34, %22, %cst_13 {dimension_numbers = #tpu.dot_dimension_numbers<[1], [0], [0], [1], [0, 0, 1, 1], [], []>} : vector<8x8xf32>, vector<8x8xf32>, vector<8x8xf32> -> vector<8x8xf32>
    %c2_i32 = arith.constant 2 : i32
    %36 = arith.muli %arg2, %c2_i32 : i32
    %c0_i32_14 = arith.constant 0 : i32
    %37 = arith.addi %36, %c0_i32_14 : i32
    %38 = arith.index_cast %37 : i32 to index
    %c0_15 = arith.constant 0 : index
    %c0_16 = arith.constant 0 : index
    %39 = vector.load %arg8[%38, %c0_15, %c0_16] : memref<4x8x32xf32, #tpu.memory_space<vmem>>, vector<1x8x32xf32>
    %40 = vector.shape_cast %39 : vector<1x8x32xf32> to vector<8x32xf32>
    %cst_17 = arith.constant dense<0.000000e+00> : vector<8x32xf32>
    %41 = tpu.matmul %35, %40, %cst_17 {dimension_numbers = #tpu.dot_dimension_numbers<[1], [0], [0], [1], [0, 0, 1, 1], [], []>} : vector<8x8xf32>, vector<8x32xf32>, vector<8x32xf32> -> vector<8x32xf32>
    %42 = vector.extract_strided_slice %16 {offsets = [0, 8], sizes = [8, 8], strides = [1, 1]} : vector<8x16xf32> to vector<8x8xf32>
    %cst_18 = arith.constant dense<0.000000e+00> : vector<8x8xf32>
    %43 = tpu.matmul %42, %19, %cst_18 {dimension_numbers = #tpu.dot_dimension_numbers<[1], [1], [0], [0], [0, 0, 1, 0], [], []>} : vector<8x8xf32>, vector<8x8xf32>, vector<8x8xf32> -> vector<8x8xf32>
    %cst_19 = arith.constant dense<0xFF800000> : vector<8xf32>
    %44 = vector.multi_reduction <maximumf>, %43, %cst_19 [1] : vector<8x8xf32> to vector<8xf32>
    %45 = vector.shape_cast %44 : vector<8xf32> to vector<8x1xf32>
    %46 = vector.broadcast %45 : vector<8x1xf32> to vector<8x8xf32>
    %47 = arith.subf %43, %46 : vector<8x8xf32>
    %48 = math.exp %47 : vector<8x8xf32>
    %cst_20 = arith.constant dense<0.000000e+00> : vector<8xf32>
    %49 = vector.multi_reduction <add>, %48, %cst_20 [1] : vector<8x8xf32> to vector<8xf32>
    %50 = vector.shape_cast %49 : vector<8xf32> to vector<8x1xf32>
    %51 = tpu.reciprocal %50 {approx = true} : vector<8x1xf32> -> vector<8x1xf32>
    %52 = vector.broadcast %51 : vector<8x1xf32> to vector<8x8xf32>
    %53 = arith.mulf %48, %52 : vector<8x8xf32>
    %cst_21 = arith.constant dense<0.000000e+00> : vector<8x8xf32>
    %54 = tpu.matmul %53, %22, %cst_21 {dimension_numbers = #tpu.dot_dimension_numbers<[1], [0], [0], [1], [0, 0, 1, 1], [], []>} : vector<8x8xf32>, vector<8x8xf32>, vector<8x8xf32> -> vector<8x8xf32>
    %c2_i32_22 = arith.constant 2 : i32
    %55 = arith.muli %arg2, %c2_i32_22 : i32
    %c1_i32 = arith.constant 1 : i32
    %56 = arith.addi %55, %c1_i32 : i32
    %57 = arith.index_cast %56 : i32 to index
    %c0_23 = arith.constant 0 : index
    %c0_24 = arith.constant 0 : index
    %58 = vector.load %arg8[%57, %c0_23, %c0_24] : memref<4x8x32xf32, #tpu.memory_space<vmem>>, vector<1x8x32xf32>
    %59 = vector.shape_cast %58 : vector<1x8x32xf32> to vector<8x32xf32>
    %cst_25 = arith.constant dense<0.000000e+00> : vector<8x32xf32>
    %60 = tpu.matmul %54, %59, %cst_25 {dimension_numbers = #tpu.dot_dimension_numbers<[1], [0], [0], [1], [0, 0, 1, 1], [], []>} : vector<8x8xf32>, vector<8x32xf32>, vector<8x32xf32> -> vector<8x32xf32>
    %61 = arith.addf %41, %60 : vector<8x32xf32>
    %c0_i32_26 = arith.constant 0 : i32
    %62 = arith.cmpi eq, %arg2, %c0_i32_26 : i32
    %63 = arith.extui %62 : i1 to i32
    %c0_i32_27 = arith.constant 0 : i32
    %64 = arith.cmpi ne, %63, %c0_i32_27 : i32
    scf.if %64 {
      %c0_32 = arith.constant 0 : index
      %c0_33 = arith.constant 0 : index
      %71 = vector.load %arg9[%c0_32, %c0_33] : memref<1x32xf32, #tpu.memory_space<vmem>>, vector<1x32xf32>
      %72 = vector.broadcast %71 : vector<1x32xf32> to vector<8x32xf32>
      %73 = arith.addf %61, %72 : vector<8x32xf32>
      %c0_34 = arith.constant 0 : index
      %c0_35 = arith.constant 0 : index
      %74 = vector.load %arg11[%c0_34, %c0_35] : memref<8x32xf32, #tpu.memory_space<vmem>>, vector<8x32xf32>
      tpu.vector_store %arg11[%c0_34, %c0_35], %73 {strides = array<i32>} : memref<8x32xf32, #tpu.memory_space<vmem>>, vector<8x32xf32>,
    } else {
    }
    %c0_i32_28 = arith.constant 0 : i32
    %65 = arith.cmpi sgt, %arg2, %c0_i32_28 : i32
    %66 = arith.extui %65 : i1 to i32
    %c0_i32_29 = arith.constant 0 : i32
    %67 = arith.cmpi ne, %66, %c0_i32_29 : i32
    scf.if %67 {
      %c0_32 = arith.constant 0 : index
      %c0_33 = arith.constant 0 : index
      %71 = vector.load %arg11[%c0_32, %c0_33] : memref<8x32xf32, #tpu.memory_space<vmem>>, vector<8x32xf32>
      %72 = arith.addf %71, %61 : vector<8x32xf32>
      %c0_34 = arith.constant 0 : index
      %c0_35 = arith.constant 0 : index
      %73 = vector.load %arg11[%c0_34, %c0_35] : memref<8x32xf32, #tpu.memory_space<vmem>>, vector<8x32xf32>
      tpu.vector_store %arg11[%c0_34, %c0_35], %72 {strides = array<i32>} : memref<8x32xf32, #tpu.memory_space<vmem>>, vector<8x32xf32>,
    } else {
    }
    %c1_i32_30 = arith.constant 1 : i32
    %68 = arith.cmpi eq, %arg2, %c1_i32_30 : i32
    %69 = arith.extui %68 : i1 to i32
    %c0_i32_31 = arith.constant 0 : i32
    %70 = arith.cmpi ne, %69, %c0_i32_31 : i32
    scf.if %70 {
      %c0_32 = arith.constant 0 : index
      %c0_33 = arith.constant 0 : index
      %71 = vector.load %arg11[%c0_32, %c0_33] : memref<8x32xf32, #tpu.memory_space<vmem>>, vector<8x32xf32>
      %c0_34 = arith.constant 0 : index
      %c0_35 = arith.constant 0 : index
      %c0_36 = arith.constant 0 : index
      %72 = vector.load %arg10[%c0_34, %c0_35, %c0_36] : memref<1x8x32xf32, #tpu.memory_space<vmem>>, vector<1x8x32xf32>
      %73 = vector.shape_cast %72 : vector<1x8x32xf32> to vector<8x32xf32>
      %74 = vector.shape_cast %71 : vector<8x32xf32> to vector<1x8x32xf32>
      tpu.vector_store %arg10[%c0_34, %c0_35, %c0_36], %74 {strides = array<i32>} : memref<1x8x32xf32, #tpu.memory_space<vmem>>, vector<1x8x32xf32>,
    } else {
    }
    return
  }
  func.func @transform_0(%arg0: i32, %arg1: i32, %arg2: i32) -> (i32, i32, i32) {
    %c0_i32 = arith.constant 0 : i32
    %c0_i32_0 = arith.constant 0 : i32
    %c0_i32_1 = arith.constant 0 : i32
    return %arg0, %c0_i32, %c0_i32_0 : i32, i32, i32
  }
  func.func @transform_1(%arg0: i32, %arg1: i32, %arg2: i32) -> (i32, i32, i32) {
    %c0_i32 = arith.constant 0 : i32
    %c0_i32_0 = arith.constant 0 : i32
    %c0_i32_1 = arith.constant 0 : i32
    %c0_i32_2 = arith.constant 0 : i32
    return %c0_i32, %c0_i32_0, %c0_i32_1 : i32, i32, i32
  }
  func.func @transform_2(%arg0: i32, %arg1: i32, %arg2: i32) -> (i32, i32, i32) {
    %c0_i32 = arith.constant 0 : i32
    %c0_i32_0 = arith.constant 0 : i32
    %c0_i32_1 = arith.constant 0 : i32
    %c0_i32_2 = arith.constant 0 : i32
    return %c0_i32, %c0_i32_0, %c0_i32_1 : i32, i32, i32
  }
  func.func @transform_3(%arg0: i32, %arg1: i32, %arg2: i32) -> (i32, i32, i32) {
    %c0_i32 = arith.constant 0 : i32
    %c0_i32_0 = arith.constant 0 : i32
    %c0_i32_1 = arith.constant 0 : i32
    %c0_i32_2 = arith.constant 0 : i32
    return %c0_i32, %c0_i32_0, %c0_i32_1 : i32, i32, i32
  }
  func.func @transform_4(%arg0: i32, %arg1: i32, %arg2: i32) -> (i32, i32, i32) {
    %c0_i32 = arith.constant 0 : i32
    %c0_i32_0 = arith.constant 0 : i32
    %c0_i32_1 = arith.constant 0 : i32
    %c0_i32_2 = arith.constant 0 : i32
    return %c0_i32, %c0_i32_0, %c0_i32_1 : i32, i32, i32
  }
  func.func @transform_5(%arg0: i32, %arg1: i32, %arg2: i32) -> (i32, i32, i32) {
    %c0_i32 = arith.constant 0 : i32
    %c0_i32_0 = arith.constant 0 : i32
    %c0_i32_1 = arith.constant 0 : i32
    %c0_i32_2 = arith.constant 0 : i32
    return %c0_i32, %c0_i32_0, %c0_i32_1 : i32, i32, i32
  }
  func.func @transform_6(%arg0: i32, %arg1: i32, %arg2: i32) -> (i32, i32) {
    %c0_i32 = arith.constant 0 : i32
    %c0_i32_0 = arith.constant 0 : i32
    %c0_i32_1 = arith.constant 0 : i32
    return %c0_i32, %c0_i32_0 : i32, i32
  }
  func.func @transform_7(%arg0: i32, %arg1: i32, %arg2: i32) -> (i32, i32, i32) {
    %c0_i32 = arith.constant 0 : i32
    %c0_i32_0 = arith.constant 0 : i32
    return %arg0, %arg1, %c0_i32 : i32, i32, i32
  }
}

</mosaic_0001>

<bundles_post_ra>
// kernel: tpu_custom_call.1
= control target key start
LH: loop header
LB: loop body
LE: loop exit
PB: predicated region body
PF: predicated region fallthrough
CT: control target
= control target key end

     0   :  { %s1643_s0 = inlined_call_operand.vmem [shape: f32[2,8,32], index: 0, kind: input, shape index: {}]   ;;  %s1644_s1 = inlined_call_operand.vmem [shape: f32[2,32,16], index: 1, kind: input, shape index: {}]   ;;  %s1645_s2 = inlined_call_operand.vmem [shape: f32[2,1,16], index: 2, kind: input, shape index: {}]   ;;  %s1646_s3 = inlined_call_operand.vmem [shape: f32[2,32,16], index: 3, kind: input, shape index: {}]   ;;  %s1647_s4 = inlined_call_operand.vmem [shape: f32[2,1,16], index: 4, kind: input, shape index: {}]   ;;  %s1648_s5 = inlined_call_operand.vmem [shape: f32[4,8,32], index: 5, kind: input, shape index: {}]   ;;  %s1649_s6 = inlined_call_operand.vmem [shape: f32[1,32], index: 6, kind: input, shape index: {}]   ;;  %s1650_s7 = inlined_call_operand.hbm [shape: f32[2,8,32], index: 7, kind: output, shape index: {}]  }
   0x1   :  { %1651 = sst [smem:[#allocation8_spill]] %s1643_s0 }
   0x2   :  { %12 = vsyncpa [#allocation6], 0 }
   0x3   :  { %14 = vsyncpa [#allocation6 + $0x1], 0  ;;  %s1436_s24 = smov 0   ;;  %s1438_s25 = smov 0  }
   0x4   :  { %s1440_s26 = smov 0   ;;  %s1442_s27 = smov 0  }
   0x5   :  { %s1444_s28 = smov 0   ;;  %s1446_s29 = smov 0  }
   0x6   :  { %s1448_s30 = smov 0   ;;  %s1450_s8 = smov 0  }
   0x7 LB: > { %s1104_s9 = sadd.s32 4294967295, %s1390_s8   ;;  %s1105_s10 = sadd.s32 4294967294, %s1390_s8   ;;  %s1390_s8 = sphi %s1450_s8, %s20_s8   ;;  %s1386_s30 = sphi %s1448_s30, %s1661_s30   ;;  %s1382_s29 = sphi %s1446_s29, %s1660_s29   ;;  %s1378_s28 = sphi %s1444_s28, %s1659_s28   ;;  %s1374_s27 = sphi %s1442_s27, %s1658_s27   ;;  %s1370_s26 = sphi %s1440_s26, %s1657_s26   ;;  %s1366_s25 = sphi %s1438_s25, %s1656_s25   ;;  %s1362_s24 = sphi %s1436_s24, %s1655_s24  }
   0x8   : > { %s32_s11 = sadd.s32 1, %s1382_s29  ;;  %s39_s12 = sadd.s32 1, %s1386_s30 }
   0x9   : > { %p33_p0 = scmp.ge.s32.totalorder %s32_s11, 2  ;;  %p210_p1 = scmp.ne.s32.totalorder %s1370_s26, %s1366_s25 }
   0xa   : > { %p211_p2 = scmp.eq.s32.totalorder %s1104_s9, 3  ;;  %p216_p4 = scmp.ne.s32.totalorder %s1366_s25, %s1362_s24 }
   0xb   : > { %s1663_s11 = smov (%p33_p0, %s32_s11), 0  ;;  %s1665_s12 = smov (!%p33_p0, %s39_s12), %s1386_s30 }
   0xc   : > { %p1485_p3 = por %p211_p2, %p210_p1  ;;  %p41_p5 = scmp.ge.s32.totalorder %s1665_s12, 2 }
   0xd   : > { %p217_p6 = scmp.eq.s32.totalorder %s1105_s10, 3  ;;  %p1108_p7 = scmp.ge.s32.totalorder %s1390_s8, 1 }
   0xe   : > { %p260_p8 = scmp.lt.s32.totalorder %s1390_s8, 5  ;;  %s1667_s12 = smov (%p41_p5, %s1665_s12), 0 }
   0xf   : > { %p1495_p9 = por %p217_p6, %p216_p4  ;;  %s195_s15 = ssub.s32 %s1386_s30, %s1667_s12 }
  0x10   : > { %p261_p10 = pnand %p1108_p7, %p260_p8  ;;  %s200_s16 = sadd.s32 1, %s1370_s26 }
  0x11   : > { %p198_p11 = scmp.eq.s32.totalorder %s195_s15, 0  ;;  %s288_s18 = sand.u32 (!%p261_p10), 1, %s1366_s25  }
  0x12   : > { %264 = sbr.rel (%p261_p10) target bundleno = 1284 (0x504), region = 48  ;;  %s1111_s19 = sshll.u32 (!%p261_p10), %s1374_s27, 5 }
  0x13   : > { %s1503_s17 = scalar_select %p198_p11, %s1370_s26, %s200_s16  }
  0x14   : > { %s1509_s20 = sshll.u32 (!%p261_p10), %s288_s18, 3  ;;  %s301_s23 = scalar_lea.vmem (!%p261_p10), %s1646_s3, %s1111_s19 }
  0x15   : > { %s402_s15 = scalar_lea.vmem (!%p261_p10), %s1644_s1, %s1111_s19  ;;  %p291_p12 = scmp.lt.s32.totalorder (!%p261_p10), %s1378_s28, 1 }
  0x16   : > { %s1654_s0 = sld [smem:[#allocation8_spill]] (!%p261_p10)  ;;  %s407_s21 = scalar_lea.vmem (!%p261_p10), %s1645_s2, %s1374_s27 }
  0x17   : > { %v1392_v0 = vmov 0.0   ;;  %v305_v1 = vld [vmem:[%s301_s23 + $0x18] sm:$0xff]  ;;  %v304_v2 = vld [vmem:[%s301_s23 + $0x10] sm:$0xff]  ;;  %vm1393_vm0 = vmmov 0   ;;  %v303_v5 = vld [vmem:[%s301_s23 + $0x8] sm:$0xff]  ;;  %s292_s16 = scalar_select %p291_p12, %s1378_s28, 1 }
  0x18   : > { %1164 = vmatprep.subr.mxu0 %v1392_v0  ;;  %1175 = vmatprep.subr.mxu1 %v1392_v0  ;;  %v406_v3 = vld [vmem:[%s402_s15 + $0x18] sm:$0xff]  ;;  %v405_v4 = vld [vmem:[%s402_s15 + $0x10] sm:$0xff]  ;;  %v404_v6 = vld [vmem:[%s402_s15 + $0x8] sm:$0xff]  ;;  %vm314_vm1 = vcmask 261120   ;;  %s1114_s22 = sshll.u32 %s1374_s27, 3  ;;  %vm390_vm2 = vcmask 64512  }
  0x19   : > { %1172 = vmatprep.mubr.msk.f32.mxu0 %vm1393_vm0, %v1392_v0  ;;  %1183 = vmatprep.mubr.msk.f32.mxu1 %vm1393_vm0, %v1392_v0  ;;  %v302_v7 = vld [vmem:[%s301_s23] sm:$0xff]  ;;  %s1110_s19 = sshll.u32 %s292_s16, 3  ;;  %s1394_s23 = smov 120  }
  0x1a   : > { %1165 = vmatpush3.msra.mxu0 %v305_v1  ;;  %1176 = vmatpush3.msra.mxu1 %v406_v3  ;;  %v403_v8 = vld [vmem:[%s402_s15] sm:$0xff]  ;;  %s306_s15 = scalar_lea.vmem %s1647_s4, %s1374_s27  ;;  %s396_s10 = scalar_lea.vmem [#allocation4], %s1114_s22 }
  0x1b   : > { %1166 = vmatprep.subr.mxu0 %v1392_v0  ;;  %1177 = vmatprep.subr.mxu1 %v1392_v0  ;;  %v1112_v10 = vld [vmem:[%s306_s15] ss:$0 sm:$0xff]  ;;  %s1140_s15 = sshll.u32 %s1374_s27, 4  ;;  %p1132_p13 = scmp.ne.s32.totalorder %s1374_s27, 0 }
  0x1c   : > { %1167 = vmatpush3.msra.mxu0 %v304_v2  ;;  %1178 = vmatpush3.msra.mxu1 %v405_v4  ;;  %s294_s9 = scalar_lea.vmem %s1654_s0, %s1110_s19  ;;  %v1116_v11 = vld [vmem:[%s407_s21] ss:$0 sm:$0xff]  ;;  %s657_s21 = scalar_lea.vmem %s1648_s5, %s1140_s15 }
  0x1d   : > { %1168 = vmatprep.subr.mxu0 %v1392_v0  ;;  %1179 = vmatprep.subr.mxu1 %v1392_v0  ;;  %v299_v9 = vld [vmem:[%s294_s9] sm:$0xff]  ;;  %s389_s9 = scalar_lea.vmem [#allocation3], %s1114_s22  ;;  %v1129_v45 = vld [vmem:[%s657_s21 + $0x8] sm:$0xff]  ;;  %s290_s22 = scalar_lea.vmem [#allocation5], %s1509_s20 }
  0x1e   : > { %1169 = vmatpush3.msra.mxu0 %v303_v5  ;;  %1180 = vmatpush3.msra.mxu1 %v404_v6  ;;  %v658_v44 = vld [vmem:[%s657_s21] sm:$0xff] }
  0x1f   : > { %1170 = vmatprep.subr.mxu0 %v1392_v0  ;;  %1181 = vmatprep.subr.mxu1 %v1392_v0 }
  0x20   : > { %1171 = vmatpush3.msra.mxu0 %v302_v7  ;;  %1182 = vmatpush3.msra.mxu1 %v403_v8 }
  0x21   : > { %1173 = vmatmul.mubr.msk.f32.vlgmr.msra.gmra.mxu0 %vm314_vm1, %v299_v9  ;;  %1184 = vmatmul.mubr.msk.f32.vlgmr.msra.gmra.mxu1 %vm314_vm1, %v299_v9 }
  0x22   : > { %1186 = vmatprep.subr.mxu0 %v1392_v0  ;;  %1188 = vmatprep.mubr.msk.f32.mxu0 %vm1393_vm0, %v1392_v0 }
  0x23   : > { %1191 = vmatprep.subr.mxu1 %v1392_v0  ;;  %1193 = vmatprep.mubr.msk.f32.mxu1 %vm1393_vm0, %v1392_v0 }
  0xe1   : > { %v384_v12 = vpop.f32.mrf.mxu0  ;;  %v485_v14 = vpop.f32.mrf.mxu1 }
  0xe2   : > { %v385_v13 = vadd.f32 %v1112_v10, %v384_v12  ;;  %v486_v15 = vadd.f32 %v1116_v11, %v485_v14 }
  0xe3   : > { %v1174_v16 = vpop.f32.mrf.mxu0  ;;  %v1185_v17 = vpop.f32.mrf.mxu1 }
  0xe4   : > { %391 = vst.msk [vmem:[%s389_s9] sm:$0xff] %vm390_vm2, %v385_v13  ;;  %659 = vrot.lane.b32.xlu0 %v486_v15, %s1394_s23 }
  0xeb   : > { %v491_v18 = vld [vmem:[%s389_s9] sm:$0xff] }
  0xec   : > { %1187 = vmatpush3.xpose.msk.msra.mxu0 %vm390_vm2, %v491_v18 }
  0xed   : > { %1196 = vmatprep.subr.mxu0 %v1392_v0 }
  0xef   : > { %1189 = vmatmul.mubr.msk.f32.vlgmr.msra.gmra.mxu0 %vm390_vm2, %v486_v15 }
  0xf0   : > { %1197 = vmatpush3.xpose.msk.msra.mxu0 %vm390_vm2, %v491_v18  ;;  %1198 = vmatprep.mubr.msk.f32.mxu0 %vm1393_vm0, %v1392_v0 }
  0xf1   : > { %1206 = vmatprep.subr.mxu0 %v1392_v0 }
 0x156   : > { %v660_v19 = vpop.permute.xlu0 %659 }
 0x157   : > { %1199 = vmatmul.mubr.msk.f32.vlgmr.msra.gmra.mxu0 %vm390_vm2, %v660_v19 }
 0x158   : > { %1208 = vmatprep.mubr.msk.f32.mxu0 %vm1393_vm0, %v1392_v0  ;;  %1207 = vmatpush3.msra.mxu0 %v1129_v45 }
 0x1af   : > { %v567_v20 = vpop.f32.mrf.mxu0 }
 0x1b0   : > { %v571_v21 = vsel %vm390_vm2, %v567_v20, -inf }
 0x1b1   : > { %572 = vmax.xlane.f32.xlu0 %v571_v21  ;;  %v1190_v22 = vpop.f32.mrf.mxu0 }
 0x217   : > { %v729_v23 = vpop.f32.mrf.mxu0 }
 0x218   : > { %v733_v24 = vsel %vm390_vm2, %v729_v23, -inf }
 0x219   : > { %734 = vmax.xlane.f32.xlu1 %v733_v24  ;;  %v1200_v25 = vpop.f32.mrf.mxu0 }
 0x23a   : > { %v573_v26 = vpop.xlane.xlu0 %572 }
 0x23b   : > { %v574_v27 = vsub.f32 %v567_v20, %v573_v26 }
 0x23d   : > { %v575_v28 = vmul.f32 1.442695, %v574_v27 }
 0x23f   : > { %1290 = vpow2.f32 %v575_v28 }
 0x24c   : > { %v1291_v29 = vpop.eup %1290 }
 0x24d   : > { %v577_v30 = vsel %vm390_vm2, %v1291_v29, 0.0 }
 0x24e   : > { %578 = vadd.xlane.f32.xlu1 %v577_v30 }
 0x2a2   : > { %v735_v31 = vpop.xlane.xlu1 %734 }
 0x2a3   : > { %v736_v32 = vsub.f32 %v729_v23, %v735_v31 }
 0x2a5   : > { %v737_v33 = vmul.f32 1.442695, %v736_v32 }
 0x2a7   : > { %1292 = vpow2.f32 %v737_v33 }
 0x2b4   : > { %v1293_v34 = vpop.eup %1292 }
 0x2b5   : > { %v739_v35 = vsel %vm390_vm2, %v1293_v34, 0.0 }
 0x2b6   : > { %740 = vadd.xlane.f32.xlu1 %v739_v35 }
 0x2c7   : > { %393 = vrot.lane.b32.xlu1 %v385_v13, %s1394_s23 }
 0x2d7   : > { %v579_v36 = vpop.xlane.xlu1 %578 }
 0x2d8   : > { %1294 = vrcp.f32 %v579_v36 }
 0x2e5   : > { %v1295_v39 = vpop.eup %1294 }
 0x2e6   : > { %v581_v41 = vmul.f32 %v1295_v39, %v1291_v29 }
 0x33f   : > { %v741_v37 = vpop.xlane.xlu1 %740 }
 0x340   : > { %1296 = vrcp.f32 %v741_v37 }
 0x343   : > { %v394_v38 = vpop.permute.xlu1 %393 }
 0x344   : > { %397 = vst.msk [vmem:[%s396_s10] sm:$0xff] %vm390_vm2, %v394_v38 }
 0x34b   : > { %v493_v40 = vld [vmem:[%s396_s10] sm:$0xff] }
 0x34c   : > { %1192 = vmatpush3.msra.mxu1 %v493_v40 }
 0x34d   : > { %v1297_v42 = vpop.eup %1296  ;;  %1194 = vmatmul.mubr.msk.f32.vlgmr.msra.gmra.mxu1 %vm390_vm2, %v581_v41  ;;  %1201 = vmatprep.subr.mxu1 %v1392_v0 }
 0x34e   : > { %1202 = vmatpush3.msra.mxu1 %v493_v40  ;;  %1203 = vmatprep.mubr.msk.f32.mxu1 %vm1393_vm0, %v1392_v0  ;;  %v743_v43 = vmul.f32 %v1297_v42, %v1293_v34 }
 0x34f   : > { %1211 = vmatprep.subr.mxu1 %v1392_v0 }
 0x351   : > { %1204 = vmatmul.mubr.msk.f32.vlgmr.msra.gmra.mxu1 %vm390_vm2, %v743_v43 }
 0x352   : > { %1213 = vmatprep.mubr.msk.f32.mxu1 %vm1393_vm0, %v1392_v0  ;;  %1212 = vmatpush3.msra.mxu1 %v658_v44 }
 0x40d   : > { %v651_v46 = vpop.f32.mrf.mxu1 }
 0x40e   : > { %1214 = vmatmul.mubr.msk.f32.vlgmr.msra.gmra.mxu1 %vm390_vm2, %v651_v46 }
 0x40f   : > { %v1195_v47 = vpop.f32.mrf.mxu1 }
 0x411   : > { %v813_v48 = vpop.f32.mrf.mxu1 }
 0x412   : > { %1209 = vmatmul.mubr.msk.f32.vlgmr.msra.gmra.mxu0 %vm390_vm2, %v813_v48 }
 0x413   : > { %v1205_v49 = vpop.f32.mrf.mxu1 }
 0x4ce   : > { %v963_v50 = vpop.f32.mrf.mxu1 }
 0x4d0   : > { %v1215_v51 = vpop.f32.mrf.mxu1  ;;  %970 = sbr.rel (%p1132_p13) target bundleno = 1241 (0x4d9), region = 56 }
 0x4d2   : > { %v890_v52 = vpop.f32.mrf.mxu0 }
 0x4d3   : > { %v964_v53 = vadd.f32 %v963_v50, %v890_v52 }
 0x4d4   : > { %v1210_v54 = vpop.f32.mrf.mxu0 }
 0x4d5   : > { %v1133_v55 = vld [vmem:[%s1649_s6] ss:$0 sm:$0xff] }
 0x4d6   : > { %v978_v56 = vadd.f32 %v1133_v55, %v964_v53 }
 0x4d8   : > { %979 = vst.msk [vmem:[#allocation2] sm:$0xff] %vm314_vm1, %v978_v56 }
 0x4d9 PF: > { %p1134_p0 = scmp.le.s32.totalorder %s1374_s27, 0 }
 0x4db   : > { %983 = sbr.rel (%p1134_p0) target bundleno = 1252 (0x4e4), region = 60 }
 0x4e0   : > { %v984_v57 = vld [vmem:[#allocation2] sm:$0xff] }
 0x4e1   : > { %v985_v58 = vadd.f32 %v984_v57, %v964_v53 }
 0x4e3   : > { %986 = vst.msk [vmem:[#allocation2] sm:$0xff] %vm314_vm1, %v985_v58 }
 0x4e4 PF: > { %p1135_p1 = scmp.ne.s32.totalorder %s1374_s27, 1 }
 0x4e6   : > { %990 = sbr.rel (%p1135_p1) target bundleno = 1261 (0x4ed), region = 64 }
 0x4eb   : > { %v991_v59 = vld [vmem:[#allocation2] sm:$0xff] }
 0x4ec   : > { %992 = vst.msk [vmem:[%s290_s22] sm:$0xff] %vm314_vm1, %v991_v59 }
 0x4ed PF: > { %s1137_s20 = sshll.u32 %s1378_s28, 7  ;;  %s1008_s19 = sshll.u32 %s290_s22, 4  ;;  %s1009_s19 = int_to_ptr.vmem [resolvable:$true] %s1008_s19 }
 0x4ee   : > { %s1006_s16 = scalar_lea.hbm %s1650_s7, %s1137_s20  ;;  %s994_s21 = scalar_lea.sflag [#allocation6], %s288_s18 }
 0x4ef   : > { %s1298_s9 = scalar_lea.vmem %s1009_s19, 128  ;;  %s1395_s27 = smov [#allocation5]  }
 0x4f0   : > { %p1299_p2 = scmp.ne.s32.totalorder %s1009_s19, %s1298_s9  ;;  %s1302_s23 = sshll.u32 %s1395_s27, 4  ;;  %s1303_s23 = int_to_ptr.vmem [resolvable:$false] %s1302_s23 }
 0x4f1   : > { %s1304_s0 = scalar_lea.vmem %s1303_s23, 256  ;;  %p1305_p6 = scmp.lt.s32.totalorder %s1009_s19, %s1303_s23 }
 0x4f2   : > { %p1300_p4 = pnand %p1299_p2, %p1485_p3  ;;  %p1306_p7 = scmp.lt.s32.totalorder %s1304_s0, %s1298_s9 }
 0x4f4   : > { %p1301_p5 = pneg %p1300_p4  ;;  %p1307_p8 = por %p1306_p7, %p1305_p6 }
 0x4f6   : > { %p1308_p10 = pnand %p1307_p8, %p1301_p5 }
 0x4f8   : > { %1311 = shalt.err (!%p1308_p10)
}
 0x4f9   : > { %s1312_s28 = scalar_lea.hbm %s1006_s16, 128  ;;  %s1316_s20 = scalar_lea.hbm %s1650_s7, 256 }
 0x4fa   : > { %p1313_p11 = scmp.ne.s32.totalorder %s1006_s16, %s1312_s28  ;;  %p1317_p0 = scmp.lt.s32.totalorder %s1006_s16, %s1650_s7 }
 0x4fb   : > { %p1318_p1 = scmp.lt.s32.totalorder %s1316_s20, %s1312_s28 }
 0x4fc   : > { %p1314_p12 = pnand %p1313_p11, %p1485_p3 }
 0x4fd   : > { %p1319_p2 = por %p1318_p1, %p1317_p0 }
 0x4fe   : > { %p1315_p13 = pneg %p1314_p12 }
 0x500   : > { %p1320_p4 = pnand %p1319_p2, %p1315_p13 }
 0x502   : > { %1323 = shalt.err (!%p1320_p4)
}
 0x503   : > { %1216 = dma.vmem_to_hbm [thread:$0]  (%p1485_p3), %s1009_s19, 128, %s1006_s16, %s994_s21  }
 0x504 PF: > { %p1222_p5 = scmp.ge.s32.totalorder %s1390_s8, 2  ;;  %s1020_s0 = sand.u32 1, %s1362_s24  }
 0x505   : > { %s1021_s9 = scalar_lea.sflag [#allocation6], %s1020_s0 }
 0x506   : > { %p1219_p6 = pnand %p1222_p5, %p1495_p9 }
 0x508   : > { %p1220_p7 = pneg %p1219_p6 }
 0x50a   : > { %1357 = dma.done.wait (%p1220_p7), %s1021_s9, 128  }
 0x50b   : > { %1359 = vsyncadd (%p1220_p7), %s1021_s9, 4294967168  ;;  %s20_s8 = sadd.s32 1, %s1390_s8   ;;  %s1655_s24 = smov %s1366_s25 }
 0x50c   : > { %p17_p8 = scmp.ge.s32.totalorder %s20_s8, 6   ;;  %s1656_s25 = smov %s1370_s26 }
 0x50d   : > { %s1657_s26 = smov %s1503_s17  ;;  %s1658_s27 = smov %s1382_s29 }
 0x50e   : > { %s1659_s28 = smov %s1386_s30  ;;  %s1660_s29 = smov %s1663_s11 }
 0x50f   : > { %s1661_s30 = smov %s1667_s12  ;;  %19 = sbr.rel (!%p17_p8) target bundleno = 7 (0x7), region = 110 }
 0x514   :  { %1026 = vsyncpa [#allocation6], 1 }
 0x515   :  { %1028 = vsyncpa [#allocation6 + $0x1], 1 }

</bundles_post_ra>
